<compile_context>
chip_gen: v5e
topology: v5e:2x2
jax: 0.10.0
libtpu: 0.0.40
codegen_flags: <defaults>
</compile_context>

<pallas_src>
import functools

import jax
import jax.numpy as jnp
from jax.experimental import pallas as pl
from jax.experimental.pallas import tpu as pltpu


def _round_up(x, m):
    return (x + m - 1) // m * m


def _cdiv(a, b):
    return -(-a // b)


def _vmem_limit_bytes():
    """Generation-aware scoped-VMEM limit: big on v5e/v6e (128 MiB physical),
    conservative on v7x (64 MiB per TensorCore) or when the query fails."""
    try:
        cap = pltpu.get_tpu_info().vmem_capacity_bytes
    except Exception:  # pragma: no cover - conservative fallback
        cap = 64 * 1024 * 1024
    if cap >= 100 * 1024 * 1024:          # v5e / v6e class (128 MiB)
        return 64 * 1024 * 1024
    return 40 * 1024 * 1024               # v7x class (64 MiB per TC): leave headroom


def _choose_block_rows(B, C, in_bytes, vmem_limit):
    """Pick a row-tile size TB (multiple of 8).

    Working set per grid step ~= double-buffered input (2 * TB * C * in_bytes) plus
    ~5 live f32 (TB, C) temporaries (upcast x / z / ez / p / weighted log-probs) at the
    reduce boundaries.  Keep that under ~75% of the scoped-VMEM limit, and keep the
    grid >= 2 blocks (targeting ~8) when B > 8 so megacore can shard it.
    """
    per_row = C * (2 * in_bytes + 5 * 4)
    budget = int(vmem_limit * 0.75)
    tb = budget // max(1, per_row)
    tb = max(8, (tb // 8) * 8)
    tb = min(tb, 1024)                     # amortizes per-step overhead; bigger buys ~nothing
    if B > 8:
        # Ensure several grid blocks (megacore sharding + pipeline depth), never < 8 rows.
        tb_split = max(8, _round_up(_cdiv(B, 8), 8))
        tb = min(tb, tb_split)
    tb = min(tb, _round_up(B, 8))
    return tb


def _pow_static(x, g):
    """x ** g for a static Python exponent; small integer exponents use a multiply chain
    (VPU) instead of the log+exp pow lowering (EUP)."""
    g = float(g)
    if g == 0.0:
        return jnp.float32(1.0)            # matches torch.pow(base, 0) == 1 (incl. base==0)
    if g.is_integer() and 0.0 < g <= 16.0:
        n = int(g)
        result = None
        base = x
        while n:
            if n & 1:
                result = base if result is None else result * base
            n >>= 1
            if n:
                base = base * base
        return result
    # TODO(synk): non-integer gammas fall back to jnp.power (transcendental path); the
    # maximum() guard avoids NaNs torch.pow would produce for a slightly-negative base.
    return jnp.power(jnp.maximum(x, 0.0), g)


def _asl_kernel(x_ref, tgt_ref, out_ref, *, gamma_pos, gamma_neg, eps,
                num_classes, total_rows, block_rows):
    x = x_ref[...].astype(jnp.float32)                       # (TB, C)
    tgt = tgt_ref[...]                                       # (TB, 1) int32

    # ---- log_softmax(dim=-1); exp(z) reused for probabilities (1 EUP exp / element) ----
    m = jnp.max(x, axis=-1, keepdims=True)
    z = x - m
    ez = jnp.exp(z)                                          # (TB, C)
    s = jnp.sum(ez, axis=-1, keepdims=True)                  # (TB, 1)
    inv_s = pl.reciprocal(s, approx=True)                    # EUP slot, not a VALU divide
    log_preds = z - jnp.log(s)                               # (TB, C)
    p = ez * inv_s                                           # softmax prob

    # ---- one-hot mask (scatter_(1, target, 1) equivalent) ----
    col = jax.lax.broadcasted_iota(jnp.int32, x.shape, 1)
    is_target = col == tgt                                   # (TB, C) bool

    # ---- asymmetric focusing: (1-p)^gamma_pos on target class, p^gamma_neg elsewhere ----
    neg_w = _pow_static(p, gamma_neg)
    if gamma_pos == 0.0:
        # Default case: weight on the target class is exactly 1.
        wl = jnp.where(is_target, log_preds, neg_w * log_preds)
    else:
        pos_w = _pow_static(1.0 - p, gamma_pos)
        wl = jnp.where(is_target, pos_w, neg_w) * log_preds

    # ---- label smoothing folded into the row reduction (no full-width select) ----
    # loss_row = -(smooth_lo * sum_c wl + (smooth_hi - smooth_lo) * wl[target])
    full = jnp.sum(wl, axis=-1, keepdims=True)               # (TB, 1)
    tgt_term = jnp.sum(jnp.where(is_target, wl, 0.0), axis=-1, keepdims=True)
    smooth_hi = 1.0 - eps + eps / num_classes
    smooth_lo = eps / num_classes
    loss_b = -(smooth_lo * full + (smooth_hi - smooth_lo) * tgt_term)   # (TB, 1)

    # ---- mask rows of the ragged last block, emit per-block partial sum ----
    row = (jax.lax.broadcasted_iota(jnp.int32, (block_rows, 1), 0)
           + pl.program_id(0) * block_rows)
    loss_b = jnp.where(row < total_rows, loss_b, 0.0)
    out_ref[0, 0] = jnp.sum(loss_b)


def asl_single_label_loss(inputs, target, *, gamma_pos=0.0, gamma_neg=4.0,
                          eps=0.1, block_rows=None):
    """inputs: (B, C) float, target: (B,) int. Returns scalar f32 loss ('mean' reduction)."""
    B, C = inputs.shape
    in_bytes = jnp.dtype(inputs.dtype).itemsize
    vmem_limit = _vmem_limit_bytes()

    if block_rows is None:
        block_rows = _choose_block_rows(B, C, in_bytes, vmem_limit)
    TB = int(block_rows)
    num_blocks = _cdiv(B, TB)              # ragged grid: no wrapper-side padding pass

    # TODO(synk): for C < 128 each vreg only fills C of 128 lanes; a lane-dense layout
    # (folding multiple rows into the lane dim) would need a segmented softmax and is
    # not implemented here.

    tgt = target.astype(jnp.int32).reshape(B, 1)   # tiny (B,) -> (B,1); negligible traffic

    kernel = functools.partial(
        _asl_kernel,
        gamma_pos=float(gamma_pos), gamma_neg=float(gamma_neg), eps=float(eps),
        num_classes=float(C), total_rows=B, block_rows=TB,
    )

    partials = pl.pallas_call(
        kernel,
        out_shape=jax.ShapeDtypeStruct((num_blocks, 1), jnp.float32),
        grid=(num_blocks,),
        in_specs=[
            pl.BlockSpec((TB, C), lambda i: (i, 0)),      # logits tile (native dtype)
            pl.BlockSpec((TB, 1), lambda i: (i, 0)),      # target column
        ],
        out_specs=pl.BlockSpec((1, 1), lambda i: (i, 0),
                               memory_space=pltpu.MemorySpace.SMEM),
        compiler_params=pltpu.CompilerParams(
            dimension_semantics=("parallel",),            # lets v7x shard across both TCs
            vmem_limit_bytes=vmem_limit,
        ),
        cost_estimate=pl.CostEstimate(
            flops=12 * B * C,
            transcendentals=B * C + 2 * B,
            bytes_accessed=B * C * in_bytes + B * 4 + num_blocks * 4,
        ),
    )(inputs, tgt)

    return jnp.sum(partials) / jnp.float32(B)


def _reference(inputs, target, gamma_pos=0.0, gamma_neg=4.0, eps=0.1):
    # Pure-JAX reference mirroring the PyTorch module, for a sanity check.
    B, C = inputs.shape
    log_preds = jax.nn.log_softmax(inputs.astype(jnp.float32), axis=-1)
    targets = jax.nn.one_hot(target, C, dtype=jnp.float32)
    anti = 1.0 - targets
    xs_pos = jnp.exp(log_preds) * targets
    xs_neg = (1.0 - jnp.exp(log_preds)) * anti
    w = jnp.power(1.0 - xs_pos - xs_neg, gamma_pos * targets + gamma_neg * anti)
    lp = log_preds * w
    smoothed = targets * (1.0 - eps) + eps / C
    return jnp.mean(jnp.sum(-smoothed * lp, axis=-1))


if __name__ == "__main__":
    key = jax.random.PRNGKey(0)
    k1, k2 = jax.random.split(key)

    B, C = 8, 16  # (batch_size, number_classes)
    inputs = jax.random.normal(k1, (B, C), dtype=jnp.float32)
    target = jax.random.randint(k2, (B,), 0, C, dtype=jnp.int32)

    loss = asl_single_label_loss(inputs, target, gamma_pos=0.0, gamma_neg=4.0, eps=0.1)
    jax.block_until_ready(loss)

    ref = _reference(inputs, target)
    # Tolerance allows for the approximate EUP reciprocal, which only perturbs the
    # asymmetric (p^gamma_neg) weight on the small label-smoothing terms (typ. <1e-4 rel).
    assert jnp.allclose(loss, ref, atol=1e-3, rtol=1e-3), (loss, ref)

    print("KERNEL_OK")
</pallas_src>

<mosaic_0001>
module attributes {stable_mosaic.version = 11 : i64} {
  func.func @_asl_kernel(%arg0: i32, %arg1: memref<8x16xf32, #tpu.memory_space<vmem>>, %arg2: memref<8x1xi32, #tpu.memory_space<vmem>>, %arg3: memref<1x1xf32, #tpu.memory_space<smem>>) attributes {dimension_semantics = [#tpu.dimension_semantics<parallel>], iteration_bounds = array<i64: 1>, scalar_prefetch = 0 : i64, scratch_operands = 0 : i64, tpu.core_type = #tpu.core_type<tc>, window_params = [{transform_indices = @transform_0, window_bounds = array<i64: 8, 16>}, {transform_indices = @transform_1, window_bounds = array<i64: 8, 1>}, {transform_indices = @transform_2, window_bounds = array<i64: 1, 1>}]} {
    %c0 = arith.constant 0 : index
    %c0_0 = arith.constant 0 : index
    %0 = vector.load %arg1[%c0, %c0_0] : memref<8x16xf32, #tpu.memory_space<vmem>>, vector<8x16xf32>
    %c0_1 = arith.constant 0 : index
    %c0_2 = arith.constant 0 : index
    %1 = vector.load %arg2[%c0_1, %c0_2] : memref<8x1xi32, #tpu.memory_space<vmem>>, vector<8x1xi32>
    %cst = arith.constant dense<0xFF800000> : vector<8xf32>
    %2 = vector.multi_reduction <maximumf>, %0, %cst [1] : vector<8x16xf32> to vector<8xf32>
    %3 = vector.shape_cast %2 : vector<8xf32> to vector<8x1xf32>
    %4 = vector.broadcast %3 : vector<8x1xf32> to vector<8x16xf32>
    %5 = arith.subf %0, %4 : vector<8x16xf32>
    %6 = math.exp %5 : vector<8x16xf32>
    %cst_3 = arith.constant dense<0.000000e+00> : vector<8xf32>
    %7 = vector.multi_reduction <add>, %6, %cst_3 [1] : vector<8x16xf32> to vector<8xf32>
    %8 = vector.shape_cast %7 : vector<8xf32> to vector<8x1xf32>
    %9 = tpu.reciprocal %8 {approx = true} : vector<8x1xf32> -> vector<8x1xf32>
    %10 = math.log %8 : vector<8x1xf32>
    %11 = vector.broadcast %10 : vector<8x1xf32> to vector<8x16xf32>
    %12 = arith.subf %5, %11 : vector<8x16xf32>
    %13 = vector.broadcast %9 : vector<8x1xf32> to vector<8x16xf32>
    %14 = arith.mulf %6, %13 : vector<8x16xf32>
    %15 = tpu.iota {dimensions = array<i32: 1>} : vector<8x16xi32>
    %16 = vector.broadcast %1 : vector<8x1xi32> to vector<8x16xi32>
    %17 = arith.cmpi eq, %15, %16 : vector<8x16xi32>
    %18 = arith.mulf %14, %14 : vector<8x16xf32>
    %19 = arith.mulf %18, %18 : vector<8x16xf32>
    %20 = arith.mulf %19, %12 : vector<8x16xf32>
    %21 = arith.select %17, %12, %20 : vector<8x16xi1>, vector<8x16xf32>
    %cst_4 = arith.constant dense<0.000000e+00> : vector<8xf32>
    %22 = vector.multi_reduction <add>, %21, %cst_4 [1] : vector<8x16xf32> to vector<8xf32>
    %23 = vector.shape_cast %22 : vector<8xf32> to vector<8x1xf32>
    %cst_5 = arith.constant 0.000000e+00 : f32
    %24 = vector.broadcast %cst_5 : f32 to vector<8x16xf32>
    %25 = arith.select %17, %21, %24 : vector<8x16xi1>, vector<8x16xf32>
    %cst_6 = arith.constant dense<0.000000e+00> : vector<8xf32>
    %26 = vector.multi_reduction <add>, %25, %cst_6 [1] : vector<8x16xf32> to vector<8xf32>
    %27 = vector.shape_cast %26 : vector<8xf32> to vector<8x1xf32>
    %cst_7 = arith.constant 6.250000e-03 : f32
    %28 = vector.broadcast %cst_7 : f32 to vector<8x1xf32>
    %29 = arith.mulf %28, %23 : vector<8x1xf32>
    %cst_8 = arith.constant 0.899999976 : f32
    %30 = vector.broadcast %cst_8 : f32 to vector<8x1xf32>
    %31 = arith.mulf %30, %27 : vector<8x1xf32>
    %32 = arith.addf %29, %31 : vector<8x1xf32>
    %cst_9 = arith.constant 0.000000e+00 : f32
    %33 = vector.broadcast %cst_9 : f32 to vector<8x1xf32>
    %34 = arith.subf %33, %32 : vector<8x1xf32>
    %35 = tpu.iota {dimensions = array<i32: 0>} : vector<8x1xi32>
    %c8_i32 = arith.constant 8 : i32
    %36 = arith.muli %arg0, %c8_i32 : i32
    %37 = vector.broadcast %36 : i32 to vector<8x1xi32>
    %38 = arith.addi %35, %37 : vector<8x1xi32>
    %c8_i32_10 = arith.constant 8 : i32
    %39 = vector.broadcast %c8_i32_10 : i32 to vector<8x1xi32>
    %40 = arith.cmpi slt, %38, %39 : vector<8x1xi32>
    %cst_11 = arith.constant 0.000000e+00 : f32
    %41 = vector.broadcast %cst_11 : f32 to vector<8x1xf32>
    %42 = arith.select %40, %34, %41 : vector<8x1xi1>, vector<8x1xf32>
    %43 = vector.shape_cast %42 : vector<8x1xf32> to vector<1x8x1xf32>
    %cst_12 = arith.constant dense<0.000000e+00> : vector<1xf32>
    %44 = vector.multi_reduction <add>, %43, %cst_12 [1, 2] : vector<1x8x1xf32> to vector<1xf32>
    %45 = vector.shape_cast %44 : vector<1xf32> to vector<1x1x1xf32>
    %46 = vector.extract %45[0, 0, 0] : f32 from vector<1x1x1xf32>
    %c0_13 = arith.constant 0 : index
    %c0_14 = arith.constant 0 : index
    %47 = memref.load %arg3[%c0_13, %c0_14] : memref<1x1xf32, #tpu.memory_space<smem>>
    memref.store %46, %arg3[%c0_13, %c0_14] : memref<1x1xf32, #tpu.memory_space<smem>>
    return
  }
  func.func @transform_0(%arg0: i32) -> (i32, i32) {
    %c0_i32 = arith.constant 0 : i32
    %c0_i32_0 = arith.constant 0 : i32
    return %arg0, %c0_i32 : i32, i32
  }
  func.func @transform_1(%arg0: i32) -> (i32, i32) {
    %c0_i32 = arith.constant 0 : i32
    %c0_i32_0 = arith.constant 0 : i32
    return %arg0, %c0_i32 : i32, i32
  }
  func.func @transform_2(%arg0: i32) -> (i32, i32) {
    %c0_i32 = arith.constant 0 : i32
    %c0_i32_0 = arith.constant 0 : i32
    return %arg0, %c0_i32 : i32, i32
  }
}

</mosaic_0001>

<bundles_post_ra>
// kernel: tpu_custom_call.1
= control target key start
LH: loop header
LB: loop body
LE: loop exit
PB: predicated region body
PF: predicated region fallthrough
CT: control target
= control target key end

     0   :  { %vm14_vm0 = vcmask 130048   ;;  %s141_s0 = inlined_call_operand.vmem [shape: f32[8,16], index: 0, kind: input, shape index: {}]   ;;  %s142_s1 = inlined_call_operand.vmem [shape: s32[8,1], index: 1, kind: input, shape index: {}]   ;;  %s143_s2 = inlined_call_operand.hbm [shape: f32[1,1], index: 2, kind: output, shape index: {}]  }
   0x1   :  { %v12_v0 = vld [vmem:[%s141_s0] sm:$0xff] }
   0x2   :  { %7 = vsyncpa [#allocation3], 0  ;;  %v15_v1 = vsel %vm14_vm0, %v12_v0, -inf  ;;  %v13_v2 = vld [vmem:[%s142_s1] sm:$0xff]  ;;  %v111_v3 = vmov 0   ;;  %v29_v10 = vlaneseq  ;;  %vm57_vm2 = vcmask 7168  }
   0x3   :  { %16 = vmax.xlane.f32.xlu0 %v15_v1  ;;  %89 = vset.pattern.permute.xlu1 %v111_v3  ;;  %s75_s13 = sshll.u32 %s143_s2, 4  ;;  %s112_s15 = smov [#allocation2]   ;;  %s76_s13 = int_to_ptr.hbm [resolvable:$true] %s75_s13 }
   0x4   :  { %90 = vset.pattern.permute.xlu0 %v111_v3  ;;  %32 = vperm.xlu1 %89, %v13_v2   ;;  %v30_v11 = vand.u32 127, %v29_v10 }
  0x76   :  { %v17_v4 = vpop.xlane.xlu0 %16  ;;  %v33_v13 = vpop.permute.xlu1 %32 }
  0x77   :  { %v18_v5 = vsub.f32 %v12_v0, %v17_v4  ;;  %vm34_vm1 = vcmp.eq.s32.totalorder %v30_v11, %v33_v13 }
  0x79   :  { %v19_v6 = vmul.f32 1.442695, %v18_v5 }
  0x7b   :  { %91 = vpow2.f32 %v19_v6 }
  0x81   :  { %v92_v7 = vpop.eup %91 }
  0x82   :  { %v21_v8 = vsel %vm14_vm0, %v92_v7, 0.0 }
  0x83   :  { %22 = vadd.xlane.f32.xlu0 %v21_v8 }
  0xf6   :  { %v23_v9 = vpop.xlane.xlu0 %22 }
  0xf7   :  { %93 = vrcp.f32 %v23_v9 }
  0xf8   :  { %95 = vlog2.f32 %v23_v9 }
  0xfd   :  { %v94_v12 = vpop.eup %93 }
  0xfe   :  { %v96_v14 = vpop.eup %95  ;;  %v28_v15 = vmul.f32 %v94_v12, %v92_v7 }
  0xff   :  { %v26_v16 = vmul.f32 0.6931472, %v96_v14 }
 0x100   :  { %v35_v17 = vmul.f32 %v28_v15, %v28_v15 }
 0x101   :  { %v27_v18 = vsub.f32 %v18_v5, %v26_v16 }
 0x102   :  { %v36_v19 = vmul.f32 %v35_v17, %v35_v17 }
 0x103   :  { %v42_v20 = vsel %vm34_vm1, %v27_v18, 0.0 }
 0x104   :  { %v43_v21 = vsel %vm14_vm0, %v42_v20, 0.0  ;;  %v37_v22 = vmul.f32 %v36_v19, %v27_v18 }
 0x105   :  { %44 = vadd.xlane.f32.xlu2 %v43_v21 }
 0x106   :  { %v38_v23 = vsel %vm34_vm1, %v27_v18, %v37_v22 }
 0x107   :  { %v39_v24 = vsel %vm14_vm0, %v38_v23, 0.0 }
 0x108   :  { %40 = vadd.xlane.f32.xlu1 %v39_v24 }
 0x178   :  { %v45_v25 = vpop.xlane.xlu2 %44 }
 0x179   :  { %v47_v27 = vmul.f32 0.9, %v45_v25 }
 0x17b   :  { %v41_v26 = vpop.xlane.xlu1 %40 }
 0x17c   :  { %v46_v28 = vmul.f32 0.00625, %v41_v26 }
 0x17e   :  { %v48_v29 = vadd.f32 %v47_v27, %v46_v28 }
 0x180   :  { %v49_v30 = vsub.f32 0.0, %v48_v29 }
 0x182   :  { %v58_v31 = vsel %vm57_vm2, %v49_v30, 0.0 }
 0x183   :  { %59 = vadd.xlane.f32.xlu2 %v58_v31 }
 0x1f6   :  { %v60_v32 = vpop.xlane.xlu2 %59 }
 0x1f7   :  { %v61_v33 = vrot.slane %v60_v32, 4 }
 0x1f9   :  { %v62_v34 = vadd.f32 %v61_v33, %v60_v32 }
 0x1fb   :  { %v63_v35 = vrot.slane %v62_v34, 2 }
 0x1fd   :  { %v64_v36 = vadd.f32 %v63_v35, %v62_v34 }
 0x1ff   :  { %v65_v37 = vrot.slane %v64_v36, 1 }
 0x201   :  { %v66_v38 = vadd.f32 %v65_v37, %v64_v36 }
 0x203   :  { %85 = vpush %v66_v38 }
 0x234   :  { %s86_s14 = spop %85 }
 0x235   :  { %69 = sst [smem:[#allocation2]] %s86_s14 }
 0x236   :  { %78 = dma.smem_to_hbm %s112_s15, 16, %s76_s13, [#allocation3]  }
 0x237   :  { %109 = dma.done.wait [#allocation3], 16  }
 0x238   :  { %110 = vsyncadd [#allocation3], 4294967280 }
 0x239   :  { %83 = sfence }
 0x23a   :  { %84 = vsyncpa [#allocation3], 1 }

</bundles_post_ra>
